<compile_context>
chip_gen: v5e
topology: v5e:2x2
jax: 0.10.0
libtpu: 0.0.40
codegen_flags: <defaults>
</compile_context>

<pallas_src>
import jax
import jax.numpy as jnp
from jax.experimental import pallas as pl
from jax.experimental.pallas import tpu as pltpu

EPS = 1e-5  # PyTorch BatchNorm1d default eps


def _round_up(x, m):
    return ((x + m - 1) // m) * m


# ---------------------------------------------------------------------------
# Pass 1: conv-as-matmul (lane-dense via block-diagonal weights) + per-tile
#          partial sum / sum-of-squares for the BN batch statistics.
# ---------------------------------------------------------------------------
def _conv_stats_kernel(p_ref, w_ref, y_ref, psum_ref, pssq_ref):
    y = jnp.dot(p_ref[...], w_ref[...], preferred_element_type=jnp.float32)
    y_ref[...] = y
    psum_ref[...] = jnp.sum(y, axis=0, keepdims=True).reshape(psum_ref.shape)
    pssq_ref[...] = jnp.sum(y * y, axis=0, keepdims=True).reshape(pssq_ref.shape)


# ---------------------------------------------------------------------------
# Pass 2: fused BN affine (single FMA) + ReLU, fully lane-dense.
# ---------------------------------------------------------------------------
def _bn_relu_kernel(y_ref, scale_ref, shift_ref, o_ref):
    o_ref[...] = jnp.maximum(y_ref[...] * scale_ref[...] + shift_ref[...], 0.0)


def conv_block_forward(x_ncl, weight, bias, gamma, beta, *, padding=1, stride=1):
    """x_ncl: (N, C_in, L); weight: (C_out, C_in, K); returns (N, C_out, L_out)."""
    N, C_in, L = x_ncl.shape
    C_out, _, K = weight.shape
    L_out = (L + 2 * padding - K) // stride + 1
    M = N * L_out
    CK = K * C_in
    out_dtype = x_ncl.dtype

    # Conv1d bias is exactly cancelled by training-mode BN mean subtraction.
    del bias

    # --- glue (plain JAX): im2col + parameter packing -------------------------
    # TODO(synk): fold im2col into pass 1 (DMA an (L_tile+K-1, C_in) slab and do
    # K shifted matmuls) to cut ~K x input HBM traffic; kept in the wrapper here
    # for lowering robustness.
    x_nlc = jnp.transpose(x_ncl, (0, 2, 1)).astype(jnp.float32)        # (N, L, C_in)
    x_pad = jnp.pad(x_nlc, ((0, 0), (padding, padding), (0, 0)))
    patches = jnp.concatenate(
        [x_pad[:, k:k + stride * L_out:stride, :] for k in range(K)], axis=-1
    )                                                                  # (N, L_out, K*C_in)
    patches2d = patches.reshape(M, CK)

    # Lane-dense packing: fold `group` consecutive output rows into the lane axis.
    group = 128 // C_out if (C_out <= 128 and 128 % C_out == 0) else 1
    lane_w = group * C_out
    gck = group * CK

    tm_unit = 8 * group                      # flat-view tile rows must be multiple of 8
    tm = min(1024, _round_up(M, tm_unit))    # ~1024 original rows per tile
    tm = _round_up(tm, tm_unit)
    M_pad = _round_up(M, tm)
    # Zero-padded rows give y == 0 exactly (no bias), so they contribute nothing
    # to the batch statistics; we divide by the true M below and slice them off
    # at the end.
    if M_pad > M:
        patches2d = jnp.pad(patches2d, ((0, M_pad - M), (0, 0)))

    m_flat = M_pad // group
    tm_flat = tm // group
    patches_g = patches2d.reshape(m_flat, gck)                         # free reshape

    # weight[(co, ci, k)] -> w2d[k*C_in + ci, co]; block-diagonal replication so
    # one matmul writes `group` output rows packed into the 128-lane axis.
    w2d = jnp.transpose(weight, (2, 1, 0)).reshape(CK, C_out).astype(jnp.float32)
    w_bd = jnp.kron(jnp.eye(group, dtype=jnp.float32), w2d)            # (gck, lane_w)

    G = M_pad // tm
    grid = (G,)

    # --- pass 1: matmul + per-tile batch-stat partials ("parallel" => megacore) --
    cost1 = pl.CostEstimate(
        flops=2 * m_flat * gck * lane_w + 4 * m_flat * lane_w,
        transcendentals=0,
        bytes_accessed=4 * (m_flat * gck + gck * lane_w + m_flat * lane_w
                            + 2 * G * lane_w),
    )
    y_flat, psum, pssq = pl.pallas_call(
        _conv_stats_kernel,
        out_shape=(
            jax.ShapeDtypeStruct((m_flat, lane_w), jnp.float32),
            jax.ShapeDtypeStruct((G, 1, lane_w), jnp.float32),
            jax.ShapeDtypeStruct((G, 1, lane_w), jnp.float32),
        ),
        grid=grid,
        in_specs=[
            pl.BlockSpec((tm_flat, gck), lambda i: (i, 0)),
            pl.BlockSpec((gck, lane_w), lambda i: (0, 0)),
        ],
        out_specs=(
            pl.BlockSpec((tm_flat, lane_w), lambda i: (i, 0)),
            pl.BlockSpec((1, 1, lane_w), lambda i: (i, 0, 0)),
            pl.BlockSpec((1, 1, lane_w), lambda i: (i, 0, 0)),
        ),
        compiler_params=pltpu.CompilerParams(
            dimension_semantics=("parallel",),
            vmem_limit_bytes=32 * 1024 * 1024,
        ),
        cost_estimate=cost1,
    )(patches_g, w_bd)

    # --- tiny epilogue on (C_out,) stats: fold BN into per-channel scale/shift --
    ch_sum = psum.sum(axis=0).reshape(group, C_out).sum(axis=0)
    ch_ssq = pssq.sum(axis=0).reshape(group, C_out).sum(axis=0)
    mean = ch_sum / M
    var = jnp.maximum(ch_ssq / M - mean * mean, 0.0)       # biased batch variance
    scale = gamma.astype(jnp.float32) * jax.lax.rsqrt(var + EPS)
    shift = beta.astype(jnp.float32) - mean * scale
    scale_l = jnp.tile(scale, group).reshape(1, lane_w)
    shift_l = jnp.tile(shift, group).reshape(1, lane_w)

    # --- pass 2: lane-dense fused (y * scale + shift) -> ReLU -------------------
    cost2 = pl.CostEstimate(
        flops=3 * m_flat * lane_w,
        transcendentals=0,
        bytes_accessed=4 * (2 * m_flat * lane_w + 2 * lane_w),
    )
    out_flat = pl.pallas_call(
        _bn_relu_kernel,
        out_shape=jax.ShapeDtypeStruct((m_flat, lane_w), jnp.float32),
        grid=grid,
        in_specs=[
            pl.BlockSpec((tm_flat, lane_w), lambda i: (i, 0)),
            pl.BlockSpec((1, lane_w), lambda i: (0, 0)),
            pl.BlockSpec((1, lane_w), lambda i: (0, 0)),
        ],
        out_specs=pl.BlockSpec((tm_flat, lane_w), lambda i: (i, 0)),
        compiler_params=pltpu.CompilerParams(
            dimension_semantics=("parallel",),
            vmem_limit_bytes=32 * 1024 * 1024,
        ),
        cost_estimate=cost2,
    )(y_flat, scale_l, shift_l)

    # back to PyTorch's NCL layout (flat view is bit-identical to (M_pad, C_out))
    out2d = out_flat.reshape(M_pad, C_out)[:M]
    return jnp.transpose(out2d.reshape(N, L_out, C_out), (0, 2, 1)).astype(out_dtype)


def _reference(x_ncl, weight, bias, gamma, beta, *, padding=1, stride=1):
    """Pure-JAX reference (lax conv WITH bias + batch-stat BN + relu)."""
    y = jax.lax.conv_general_dilated(
        x_ncl.astype(jnp.float32), weight.astype(jnp.float32),
        window_strides=(stride,), padding=[(padding, padding)],
        dimension_numbers=("NCH", "OIH", "NCH"),
    ) + bias.reshape(1, -1, 1)
    mean = jnp.mean(y, axis=(0, 2), keepdims=True)
    var = jnp.mean((y - mean) ** 2, axis=(0, 2), keepdims=True)
    y_hat = (y - mean) * jax.lax.rsqrt(var + EPS)
    return jnp.maximum(gamma.reshape(1, -1, 1) * y_hat + beta.reshape(1, -1, 1), 0.0)


if __name__ == "__main__":
    # ConvBlock(in_channels=4, out_chanels=8, kernel_size=3, padding=1)
    N, C_in, L = 2, 4, 16
    C_out, K, padding, stride = 8, 3, 1, 1

    key = jax.random.PRNGKey(0)
    kx, kw, kb, kg, kbt = jax.random.split(key, 5)
    x = jax.random.normal(kx, (N, C_in, L), dtype=jnp.float32)
    weight = jax.random.normal(kw, (C_out, C_in, K), dtype=jnp.float32) * 0.1
    bias = jax.random.normal(kb, (C_out,), dtype=jnp.float32) * 0.1
    gamma = 1.0 + 0.1 * jax.random.normal(kg, (C_out,), dtype=jnp.float32)
    beta = 0.1 * jax.random.normal(kbt, (C_out,), dtype=jnp.float32)

    out = conv_block_forward(x, weight, bias, gamma, beta,
                             padding=padding, stride=stride)
    jax.block_until_ready(out)

    ref = _reference(x, weight, bias, gamma, beta, padding=padding, stride=stride)
    assert out.shape == (N, C_out, L)
    assert jnp.allclose(out, ref, atol=1e-4, rtol=1e-4), "mismatch vs reference"

    print("KERNEL_OK")
</pallas_src>

<mosaic_0001>
module attributes {stable_mosaic.version = 11 : i64} {
  func.func @_conv_stats_kernel(%arg0: i32, %arg1: memref<8x192xf32, #tpu.memory_space<vmem>>, %arg2: memref<192x128xf32, #tpu.memory_space<vmem>>, %arg3: memref<8x128xf32, #tpu.memory_space<vmem>>, %arg4: memref<1x1x128xf32, #tpu.memory_space<vmem>>, %arg5: memref<1x1x128xf32, #tpu.memory_space<vmem>>) attributes {dimension_semantics = [#tpu.dimension_semantics<parallel>], iteration_bounds = array<i64: 1>, scalar_prefetch = 0 : i64, scratch_operands = 0 : i64, tpu.core_type = #tpu.core_type<tc>, window_params = [{transform_indices = @transform_0, window_bounds = array<i64: 8, 192>}, {pipeline_mode = #tpu.pipeline_mode<synchronous>, transform_indices = @transform_1, window_bounds = array<i64: 192, 128>}, {transform_indices = @transform_2, window_bounds = array<i64: 8, 128>}, {transform_indices = @transform_3, window_bounds = array<i64: 1, 1, 128>}, {transform_indices = @transform_4, window_bounds = array<i64: 1, 1, 128>}]} {
    %c0 = arith.constant 0 : index
    %c0_0 = arith.constant 0 : index
    %0 = vector.load %arg1[%c0, %c0_0] : memref<8x192xf32, #tpu.memory_space<vmem>>, vector<8x192xf32>
    %c0_1 = arith.constant 0 : index
    %c0_2 = arith.constant 0 : index
    %1 = vector.load %arg2[%c0_1, %c0_2] : memref<192x128xf32, #tpu.memory_space<vmem>>, vector<192x128xf32>
    %cst = arith.constant dense<0.000000e+00> : vector<8x128xf32>
    %2 = tpu.matmul %0, %1, %cst {dimension_numbers = #tpu.dot_dimension_numbers<[1], [0], [0], [1], [0, 0, 1, 1], [], []>} : vector<8x192xf32>, vector<192x128xf32>, vector<8x128xf32> -> vector<8x128xf32>
    %c0_3 = arith.constant 0 : index
    %c0_4 = arith.constant 0 : index
    %3 = vector.load %arg3[%c0_3, %c0_4] : memref<8x128xf32, #tpu.memory_space<vmem>>, vector<8x128xf32>
    tpu.vector_store %arg3[%c0_3, %c0_4], %2 {strides = array<i32>} : memref<8x128xf32, #tpu.memory_space<vmem>>, vector<8x128xf32>,
    %cst_5 = arith.constant dense<0.000000e+00> : vector<128xf32>
    %4 = vector.multi_reduction <add>, %2, %cst_5 [0] : vector<8x128xf32> to vector<128xf32>
    %5 = vector.shape_cast %4 : vector<128xf32> to vector<1x128xf32>
    %6 = vector.shape_cast %5 : vector<1x128xf32> to vector<1x1x128xf32>
    %c0_6 = arith.constant 0 : index
    %c0_7 = arith.constant 0 : index
    %c0_8 = arith.constant 0 : index
    %7 = vector.load %arg4[%c0_6, %c0_7, %c0_8] : memref<1x1x128xf32, #tpu.memory_space<vmem>>, vector<1x1x128xf32>
    tpu.vector_store %arg4[%c0_6, %c0_7, %c0_8], %6 {strides = array<i32>} : memref<1x1x128xf32, #tpu.memory_space<vmem>>, vector<1x1x128xf32>,
    %8 = arith.mulf %2, %2 : vector<8x128xf32>
    %cst_9 = arith.constant dense<0.000000e+00> : vector<128xf32>
    %9 = vector.multi_reduction <add>, %8, %cst_9 [0] : vector<8x128xf32> to vector<128xf32>
    %10 = vector.shape_cast %9 : vector<128xf32> to vector<1x128xf32>
    %11 = vector.shape_cast %10 : vector<1x128xf32> to vector<1x1x128xf32>
    %c0_10 = arith.constant 0 : index
    %c0_11 = arith.constant 0 : index
    %c0_12 = arith.constant 0 : index
    %12 = vector.load %arg5[%c0_10, %c0_11, %c0_12] : memref<1x1x128xf32, #tpu.memory_space<vmem>>, vector<1x1x128xf32>
    tpu.vector_store %arg5[%c0_10, %c0_11, %c0_12], %11 {strides = array<i32>} : memref<1x1x128xf32, #tpu.memory_space<vmem>>, vector<1x1x128xf32>,
    return
  }
  func.func @transform_0(%arg0: i32) -> (i32, i32) {
    %c0_i32 = arith.constant 0 : i32
    %c0_i32_0 = arith.constant 0 : i32
    return %arg0, %c0_i32 : i32, i32
  }
  func.func @transform_1(%arg0: i32) -> (i32, i32) {
    %c0_i32 = arith.constant 0 : i32
    %c0_i32_0 = arith.constant 0 : i32
    %c0_i32_1 = arith.constant 0 : i32
    return %c0_i32, %c0_i32_0 : i32, i32
  }
  func.func @transform_2(%arg0: i32) -> (i32, i32) {
    %c0_i32 = arith.constant 0 : i32
    %c0_i32_0 = arith.constant 0 : i32
    return %arg0, %c0_i32 : i32, i32
  }
  func.func @transform_3(%arg0: i32) -> (i32, i32, i32) {
    %c0_i32 = arith.constant 0 : i32
    %c0_i32_0 = arith.constant 0 : i32
    %c0_i32_1 = arith.constant 0 : i32
    return %arg0, %c0_i32, %c0_i32_0 : i32, i32, i32
  }
  func.func @transform_4(%arg0: i32) -> (i32, i32, i32) {
    %c0_i32 = arith.constant 0 : i32
    %c0_i32_0 = arith.constant 0 : i32
    %c0_i32_1 = arith.constant 0 : i32
    return %arg0, %c0_i32, %c0_i32_0 : i32, i32, i32
  }
}

</mosaic_0001>

<bundles_post_ra>
// kernel: tpu_custom_call.1
= control target key start
LH: loop header
LB: loop body
LE: loop exit
PB: predicated region body
PF: predicated region fallthrough
CT: control target
= control target key end

     0   :  { %10 = vsyncpa [#allocation3], 0  ;;  %s364_s0 = inlined_call_operand.hbm [shape: f32[8,192], index: 0, kind: input, shape index: {}]   ;;  %s365_s1 = inlined_call_operand.hbm [shape: f32[192,128], index: 1, kind: input, shape index: {}]   ;;  %s366_s2 = inlined_call_operand.hbm [shape: f32[8,128], index: 2, kind: output, shape index: {0}]   ;;  %s367_s3 = inlined_call_operand.hbm [shape: f32[1,1,128], index: 3, kind: output, shape index: {1}]   ;;  %s368_s4 = inlined_call_operand.hbm [shape: f32[1,1,128], index: 4, kind: output, shape index: {2}]  }
   0x1   :  { %11 = vsyncpa [#allocation6], 0 }
   0x2   :  { %12 = vsyncpa [#allocation4], 0 }
   0x3   :  { %13 = vsyncpa [#allocation9], 0  ;;  %s19_s17 = sshll.u32 %s364_s0, 4  ;;  %s317_s18 = smov [#allocation2]   ;;  %s20_s17 = int_to_ptr.hbm [resolvable:$true] %s19_s17 }
   0x4   :  { %s21_s19 = sshll.u32 %s317_s18, 4  ;;  %s29_s22 = sshll.u32 %s365_s1, 4  ;;  %s22_s19 = int_to_ptr.vmem [resolvable:$true] %s21_s19  ;;  %s30_s22 = int_to_ptr.hbm [resolvable:$true] %s29_s22 }
   0x5   :  { %24 = dma.hbm_to_vmem [thread:$0]  %s20_s17, 256, %s22_s19, [#allocation3]  }
   0x6   :  { %s318_s23 = smov [#allocation5]   ;;  %s319_s25 = smov 128  }
   0x7   :  { %s31_s24 = sshll.u32 %s318_s23, 4  ;;  %s320_s26 = smov 8   ;;  %s32_s24 = int_to_ptr.vmem [resolvable:$true] %s31_s24 }
   0x8   :  { %37 = dma.hbm_to_vmem [thread:$0]  %s30_s22, 3072, %s32_s24, [#allocation6], %s319_s25, %s319_s25, %s320_s26  }
   0x9   :  { %309 = dma.done.wait [#allocation3], 256  }
   0xa   :  { %310 = vsyncadd [#allocation3], 4294967040 }
   0xb   :  { %311 = dma.done.wait [#allocation6], 3072  }
   0xc   :  { %312 = vsyncadd [#allocation6], 4294964224  ;;  %v63_v0 = vld [vmem:[#allocation5 + $0x78] sm:$0xff]  ;;  %v62_v1 = vld [vmem:[#allocation5 + $0x70] sm:$0xff]  ;;  %vm72_vm0 = vcmask 523264   ;;  %s321_s0 = smov [#allocation7]  }
   0xd   :  { %76 = vmatpush.msra.mxu0 %v63_v0  ;;  %v61_v2 = vld [vmem:[#allocation5 + $0x68] sm:$0xff]  ;;  %v71_v3 = vld [vmem:[#allocation5 + $0xb8] sm:$0xff]  ;;  %v70_v4 = vld [vmem:[#allocation5 + $0xb0] sm:$0xff]  ;;  %s137_s1 = sshll.u32 %s321_s0, 4  ;;  %s139_s29 = sshll.u32 %s366_s2, 4  ;;  %s138_s1 = int_to_ptr.vmem [resolvable:$true] %s137_s1  ;;  %s140_s29 = int_to_ptr.hbm [resolvable:$true] %s139_s29 }
   0xe   :  { %v60_v5 = vld [vmem:[#allocation5 + $0x60] sm:$0xff]  ;;  %104 = vmatpush.msra.mxu1 %v71_v3  ;;  %v69_v6 = vld [vmem:[#allocation5 + $0xa8] sm:$0xff]  ;;  %v59_v7 = vld [vmem:[#allocation5 + $0x58] sm:$0xff]  ;;  %s322_s30 = smov [#allocation8]   ;;  %s150_s2 = sshll.u32 %s367_s3, 4  ;;  %s151_s2 = int_to_ptr.hbm [resolvable:$true] %s150_s2 }
   0xf   :  { %77 = vmatpush.msra.mxu0 %v62_v1  ;;  %v68_v8 = vld [vmem:[#allocation5 + $0xa0] sm:$0xff]  ;;  %v58_v9 = vld [vmem:[#allocation5 + $0x50] sm:$0xff]  ;;  %v67_v10 = vld [vmem:[#allocation5 + $0x98] sm:$0xff]  ;;  %s148_s5 = sshll.u32 %s322_s30, 4  ;;  %s323_s8 = smov [#allocation10]   ;;  %s149_s5 = int_to_ptr.vmem [resolvable:$true] %s148_s5 }
  0x10   :  { %105 = vmatpush.msra.mxu1 %v70_v4  ;;  %v57_v11 = vld [vmem:[#allocation5 + $0x48] sm:$0xff]  ;;  %v66_v12 = vld [vmem:[#allocation5 + $0x90] sm:$0xff]  ;;  %v56_v13 = vld [vmem:[#allocation5 + $0x40] sm:$0xff]  ;;  %s159_s9 = sshll.u32 %s323_s8, 4  ;;  %s161_s12 = sshll.u32 %s368_s4, 4  ;;  %s160_s9 = int_to_ptr.vmem [resolvable:$true] %s159_s9  ;;  %s162_s12 = int_to_ptr.hbm [resolvable:$true] %s161_s12 }
  0x11   :  { %78 = vmatpush.msra.mxu0 %v61_v2  ;;  %v65_v14 = vld [vmem:[#allocation5 + $0x88] sm:$0xff]  ;;  %v55_v15 = vld [vmem:[#allocation5 + $0x38] sm:$0xff]  ;;  %v64_v16 = vld [vmem:[#allocation5 + $0x80] sm:$0xff] }
  0x12   :  { %106 = vmatpush.msra.mxu1 %v69_v6  ;;  %v54_v17 = vld [vmem:[#allocation5 + $0x30] sm:$0xff]  ;;  %v47_v18 = vld [vmem:[#allocation2 + $0x8] sm:$0xff]  ;;  %v53_v19 = vld [vmem:[#allocation5 + $0x28] sm:$0xff] }
  0x13   :  { %79 = vmatpush.msra.mxu0 %v60_v5  ;;  %v52_v20 = vld [vmem:[#allocation5 + $0x20] sm:$0xff]  ;;  %v51_v21 = vld [vmem:[#allocation5 + $0x18] sm:$0xff]  ;;  %v50_v22 = vld [vmem:[#allocation5 + $0x10] sm:$0xff] }
  0x14   :  { %107 = vmatpush.msra.mxu1 %v68_v8  ;;  %v49_v23 = vld [vmem:[#allocation5 + $0x8] sm:$0xff]  ;;  %v48_v24 = vld [vmem:[#allocation5] sm:$0xff]  ;;  %v46_v25 = vld [vmem:[#allocation2] sm:$0xff] }
  0x15   :  { %80 = vmatpush.msra.mxu0 %v59_v7 }
  0x16   :  { %108 = vmatpush.msra.mxu1 %v67_v10 }
  0x17   :  { %81 = vmatpush.msra.mxu0 %v58_v9 }
  0x18   :  { %109 = vmatpush.msra.mxu1 %v66_v12 }
  0x19   :  { %82 = vmatpush.msra.mxu0 %v57_v11 }
  0x1a   :  { %110 = vmatpush.msra.mxu1 %v65_v14 }
  0x1b   :  { %83 = vmatpush.msra.mxu0 %v56_v13 }
  0x1c   :  { %111 = vmatpush.msra.mxu1 %v64_v16 }
  0x1d   :  { %84 = vmatpush.msra.mxu0 %v55_v15  ;;  %181 = vmatmul.msk.f32.vlgmr.msra.gmra.mxu1 %vm72_vm0, %v47_v18 }
  0x1f   :  { %85 = vmatpush.msra.mxu0 %v54_v17 }
  0x21   :  { %86 = vmatpush.msra.mxu0 %v53_v19 }
  0x23   :  { %87 = vmatpush.msra.mxu0 %v52_v20 }
  0x25   :  { %88 = vmatpush.msra.mxu0 %v51_v21 }
  0x27   :  { %89 = vmatpush.msra.mxu0 %v50_v22 }
  0x29   :  { %90 = vmatpush.msra.mxu0 %v49_v23 }
  0x2b   :  { %91 = vmatpush.msra.mxu0 %v48_v24 }
  0x2c   :  { %92 = vmatmul.f32.vlgmr.msra.gmra.mxu0 %v46_v25 }
  0x9a   :  { %v113_v26 = vpop.f32.mrf.mxu1 }
  0xa9   :  { %v93_v27 = vpop.f32.mrf.mxu0 }
  0xaa   :  { %v114_v28 = vadd.f32 %v113_v26, %v93_v27 }
  0xac   :  { %v117_v29 = vrot.slane %v114_v28, 4  ;;  %v124_v30 = vmul.f32 %v114_v28, %v114_v28  ;;  %116 = vst [vmem:[#allocation7] sm:$0xff] %v114_v28 }
  0xad   :  { %142 = dma.vmem_to_hbm [thread:$0]  %s138_s1, 128, %s140_s29, [#allocation4]  }
  0xae   :  { %v118_v31 = vadd.f32 %v117_v29, %v114_v28  ;;  %v125_v32 = vrot.slane %v124_v30, 4 }
  0xb0   :  { %v126_v33 = vadd.f32 %v125_v32, %v124_v30  ;;  %v119_v34 = vrot.slane %v118_v31, 2 }
  0xb2   :  { %v120_v35 = vadd.f32 %v119_v34, %v118_v31  ;;  %v127_v36 = vrot.slane %v126_v33, 2 }
  0xb4   :  { %v121_v37 = vrot.slane %v120_v35, 1  ;;  %v128_v38 = vadd.f32 %v127_v36, %v126_v33 }
  0xb6   :  { %v122_v39 = vadd.f32 %v121_v37, %v120_v35  ;;  %v129_v40 = vrot.slane %v128_v38, 1 }
  0xb8   :  { %123 = vst [vmem:[#allocation8] sm:$0x1] %v122_v39  ;;  %v130_v41 = vadd.f32 %v129_v40, %v128_v38 }
  0xb9   :  { %153 = dma.vmem_to_hbm [thread:$0]  %s149_s5, 16, %s151_s2, [#allocation9]  }
  0xba   :  { %131 = vst [vmem:[#allocation10] sm:$0x1] %v130_v41 }
  0xbb   :  { %164 = dma.vmem_to_hbm [thread:$0]  %s160_s9, 16, %s162_s12, [#allocation9]  }
  0xbc   :  { %313 = dma.done.wait [#allocation4], 128  }
  0xbd   :  { %314 = vsyncadd [#allocation4], 4294967168 }
  0xbe   :  { %315 = dma.done.wait [#allocation9], 32  }
  0xbf   :  { %316 = vsyncadd [#allocation9], 4294967264 }
  0xc0   :  { %177 = vsyncpa [#allocation3], 1 }
  0xc1   :  { %178 = vsyncpa [#allocation6], 1 }
  0xc2   :  { %179 = vsyncpa [#allocation4], 1 }
  0xc3   :  { %180 = vsyncpa [#allocation9], 1 }

</bundles_post_ra>
